<compile_context>
chip_gen: v7x
topology: tpu7x:2x2x1
jax: 0.10.0
libtpu: 0.0.40
codegen_flags: <defaults>
</compile_context>

<pallas_src>
import functools

import jax
import jax.numpy as jnp
from jax.experimental import pallas as pl
from jax.experimental.pallas import tpu as pltpu

NEG_SLOPE = 0.01  # nn.LeakyReLU() default negative_slope
LANE = 128        # lane width / MXU-friendly padding unit


def _round_up(x, m):
    return ((x + m - 1) // m) * m


def _leaky_relu(h):
    return jnp.where(h > 0, h, NEG_SLOPE * h)


def _make_mlp_kernel(n_layers):
    """Kernel over one batch tile: refs = (x, w0, b0, ..., w{L-1}, b{L-1}, out)."""

    def kernel(*refs):
        x_ref = refs[0]
        o_ref = refs[-1]
        wb = refs[1:-1]

        h = x_ref[...]  # bf16 [TB, d0_pad]
        for l in range(n_layers):
            w_ref = wb[2 * l]
            b_ref = wb[2 * l + 1]
            # MXU: bf16 operands, f32 accumulation.
            acc = jnp.dot(h.astype(jnp.bfloat16), w_ref[...],
                          preferred_element_type=jnp.float32)
            acc = acc + b_ref[...]          # f32 VPU bias add (free filler under MXU)
            if l < n_layers - 1:
                acc = _leaky_relu(acc)      # f32 VPU (no bf16 VALU needed -> v5e safe)
                h = acc.astype(jnp.bfloat16)
            else:
                h = acc
        o_ref[...] = h.astype(o_ref.dtype)

    return kernel


@functools.partial(jax.jit, static_argnames=())
def base_network_forward(x, params):
    """x: [B, input_dim] f32. params: list of (W [in,out] f32, b [1,out] f32)."""
    n_layers = len(params)
    B, in_dim = x.shape
    out_dim = params[-1][0].shape[1]

    # Padded feature dims (lane-dense, full MXU width).
    dims = [in_dim] + [W.shape[1] for (W, _) in params]
    dims_p = [_round_up(d, LANE) for d in dims]

    # Batch tile: multiple of 16 (bf16 sublane pack); large tiles amortize the
    # ~0.35 us per-step overhead; small problems collapse to a single step.
    TB = min(512, _round_up(B, 16))
    B_pad = _round_up(B, TB)
    grid = (B_pad // TB,)

    # --- Pad + cast operands (zero padding is exact: padded lanes stay zero
    # through bias=0 and LeakyReLU(0)=0, contributing nothing downstream).
    x_p = jnp.pad(x.astype(jnp.bfloat16),
                  ((0, B_pad - B), (0, dims_p[0] - in_dim)))
    ops = [x_p]
    in_specs = [pl.BlockSpec((TB, dims_p[0]), lambda i: (i, 0))]

    for l, (W, b) in enumerate(params):
        d_in, d_out = dims_p[l], dims_p[l + 1]
        W_p = jnp.pad(W.astype(jnp.bfloat16),
                      ((0, d_in - W.shape[0]), (0, d_out - W.shape[1])))
        b_p = jnp.pad(b.astype(jnp.float32),
                      ((0, 0), (0, d_out - b.shape[1])))
        ops += [W_p, b_p]
        # Constant index_map -> weights/biases DMA'd once, VMEM-resident across grid.
        in_specs += [pl.BlockSpec((d_in, d_out), lambda i: (0, 0)),
                     pl.BlockSpec((1, d_out), lambda i: (0, 0))]

    out_specs = pl.BlockSpec((TB, dims_p[-1]), lambda i: (i, 0))

    flops = 2 * B_pad * sum(dims_p[l] * dims_p[l + 1] for l in range(n_layers))
    bytes_accessed = (x_p.size * 2
                      + sum(w.size * 2 + b_.size * 4 for (w, b_) in
                            zip(ops[1::2], ops[2::2]))
                      + B_pad * dims_p[-1] * 4)

    out_full = pl.pallas_call(
        _make_mlp_kernel(n_layers),
        out_shape=jax.ShapeDtypeStruct((B_pad, dims_p[-1]), jnp.float32),
        grid_spec=pltpu.PrefetchScalarGridSpec(
            num_scalar_prefetch=0,
            grid=grid,
            in_specs=in_specs,
            out_specs=out_specs,
        ),
        compiler_params=pltpu.CompilerParams(
            dimension_semantics=("parallel",),  # batch axis -> both TCs on v7x
        ),
        cost_estimate=pl.CostEstimate(flops=flops,
                                      transcendentals=0,
                                      bytes_accessed=bytes_accessed),
    )(*ops)

    return out_full[:B, :out_dim]


def init_params(key, input_dim, hidden_dims, output_dim):
    """Deterministic PyTorch-Linear-style init (uniform +- 1/sqrt(fan_in))."""
    dims = [input_dim] + list(hidden_dims) + [output_dim]
    params = []
    for i in range(len(dims) - 1):
        key, kw, kb = jax.random.split(key, 3)
        fan_in, fan_out = dims[i], dims[i + 1]
        bound = 1.0 / jnp.sqrt(fan_in)
        W = jax.random.uniform(kw, (fan_in, fan_out), jnp.float32, -bound, bound)
        b = jax.random.uniform(kb, (1, fan_out), jnp.float32, -bound, bound)
        params.append((W, b))
    return params


def reference_forward(x, params):
    h = x
    for i, (W, b) in enumerate(params):
        if i > 0:
            h = jnp.where(h > 0, h, NEG_SLOPE * h)
        h = h @ W + b
    return h


if __name__ == "__main__":
    input_dim, hidden_dims, output_dim = 32, [64, 64], 16
    batch = 8

    key = jax.random.PRNGKey(0)
    key, kx = jax.random.split(key)
    x = jax.random.normal(kx, (batch, input_dim), jnp.float32)
    params = init_params(key, input_dim, hidden_dims, output_dim)

    out = base_network_forward(x, params)
    out = jax.block_until_ready(out)

    ref = reference_forward(x, params)
    assert out.shape == (batch, output_dim), out.shape
    # bf16 MXU operands with f32 accumulation vs. pure-f32 reference.
    assert jnp.allclose(out, ref, atol=2e-2, rtol=2e-2), \
        float(jnp.max(jnp.abs(out - ref)))

    print("KERNEL_OK")
</pallas_src>

<mosaic_0001>
module attributes {stable_mosaic.version = 11 : i64} {
  func.func @kernel(%arg0: i32, %arg1: memref<16x128xbf16, #tpu.memory_space<vmem>>, %arg2: memref<128x128xbf16, #tpu.memory_space<vmem>>, %arg3: memref<1x128xf32, #tpu.memory_space<vmem>>, %arg4: memref<128x128xbf16, #tpu.memory_space<vmem>>, %arg5: memref<1x128xf32, #tpu.memory_space<vmem>>, %arg6: memref<128x128xbf16, #tpu.memory_space<vmem>>, %arg7: memref<1x128xf32, #tpu.memory_space<vmem>>, %arg8: memref<16x128xf32, #tpu.memory_space<vmem>>) attributes {dimension_semantics = [#tpu.dimension_semantics<parallel>], iteration_bounds = array<i64: 1>, scalar_prefetch = 0 : i64, scratch_operands = 0 : i64, tpu.core_type = #tpu.core_type<tc>, window_params = [{transform_indices = @transform_0, window_bounds = array<i64: 16, 128>}, {pipeline_mode = #tpu.pipeline_mode<synchronous>, transform_indices = @transform_1, window_bounds = array<i64: 128, 128>}, {pipeline_mode = #tpu.pipeline_mode<synchronous>, transform_indices = @transform_2, window_bounds = array<i64: 1, 128>}, {pipeline_mode = #tpu.pipeline_mode<synchronous>, transform_indices = @transform_3, window_bounds = array<i64: 128, 128>}, {pipeline_mode = #tpu.pipeline_mode<synchronous>, transform_indices = @transform_4, window_bounds = array<i64: 1, 128>}, {pipeline_mode = #tpu.pipeline_mode<synchronous>, transform_indices = @transform_5, window_bounds = array<i64: 128, 128>}, {pipeline_mode = #tpu.pipeline_mode<synchronous>, transform_indices = @transform_6, window_bounds = array<i64: 1, 128>}, {transform_indices = @transform_7, window_bounds = array<i64: 16, 128>}]} {
    %c0 = arith.constant 0 : index
    %c0_0 = arith.constant 0 : index
    %0 = vector.load %arg1[%c0, %c0_0] : memref<16x128xbf16, #tpu.memory_space<vmem>>, vector<16x128xbf16>
    %c0_1 = arith.constant 0 : index
    %c0_2 = arith.constant 0 : index
    %1 = vector.load %arg2[%c0_1, %c0_2] : memref<128x128xbf16, #tpu.memory_space<vmem>>, vector<128x128xbf16>
    %cst = arith.constant dense<0.000000e+00> : vector<16x128xf32>
    %2 = tpu.matmul %0, %1, %cst {dimension_numbers = #tpu.dot_dimension_numbers<[1], [0], [0], [1], [0, 0, 1, 1], [], []>} : vector<16x128xbf16>, vector<128x128xbf16>, vector<16x128xf32> -> vector<16x128xf32>
    %c0_3 = arith.constant 0 : index
    %c0_4 = arith.constant 0 : index
    %3 = vector.load %arg3[%c0_3, %c0_4] : memref<1x128xf32, #tpu.memory_space<vmem>>, vector<1x128xf32>
    %4 = vector.broadcast %3 : vector<1x128xf32> to vector<16x128xf32>
    %5 = arith.addf %2, %4 : vector<16x128xf32>
    %cst_5 = arith.constant 0.000000e+00 : f32
    %6 = vector.broadcast %cst_5 : f32 to vector<16x128xf32>
    %7 = arith.cmpf ogt, %5, %6 : vector<16x128xf32>
    %cst_6 = arith.constant 0.00999999977 : f32
    %8 = vector.broadcast %cst_6 : f32 to vector<16x128xf32>
    %9 = arith.mulf %8, %5 : vector<16x128xf32>
    %10 = arith.select %7, %5, %9 : vector<16x128xi1>, vector<16x128xf32>
    %11 = arith.truncf %10 : vector<16x128xf32> to vector<16x128xbf16>
    %c0_7 = arith.constant 0 : index
    %c0_8 = arith.constant 0 : index
    %12 = vector.load %arg4[%c0_7, %c0_8] : memref<128x128xbf16, #tpu.memory_space<vmem>>, vector<128x128xbf16>
    %cst_9 = arith.constant dense<0.000000e+00> : vector<16x128xf32>
    %13 = tpu.matmul %11, %12, %cst_9 {dimension_numbers = #tpu.dot_dimension_numbers<[1], [0], [0], [1], [0, 0, 1, 1], [], []>} : vector<16x128xbf16>, vector<128x128xbf16>, vector<16x128xf32> -> vector<16x128xf32>
    %c0_10 = arith.constant 0 : index
    %c0_11 = arith.constant 0 : index
    %14 = vector.load %arg5[%c0_10, %c0_11] : memref<1x128xf32, #tpu.memory_space<vmem>>, vector<1x128xf32>
    %15 = vector.broadcast %14 : vector<1x128xf32> to vector<16x128xf32>
    %16 = arith.addf %13, %15 : vector<16x128xf32>
    %cst_12 = arith.constant 0.000000e+00 : f32
    %17 = vector.broadcast %cst_12 : f32 to vector<16x128xf32>
    %18 = arith.cmpf ogt, %16, %17 : vector<16x128xf32>
    %cst_13 = arith.constant 0.00999999977 : f32
    %19 = vector.broadcast %cst_13 : f32 to vector<16x128xf32>
    %20 = arith.mulf %19, %16 : vector<16x128xf32>
    %21 = arith.select %18, %16, %20 : vector<16x128xi1>, vector<16x128xf32>
    %22 = arith.truncf %21 : vector<16x128xf32> to vector<16x128xbf16>
    %c0_14 = arith.constant 0 : index
    %c0_15 = arith.constant 0 : index
    %23 = vector.load %arg6[%c0_14, %c0_15] : memref<128x128xbf16, #tpu.memory_space<vmem>>, vector<128x128xbf16>
    %cst_16 = arith.constant dense<0.000000e+00> : vector<16x128xf32>
    %24 = tpu.matmul %22, %23, %cst_16 {dimension_numbers = #tpu.dot_dimension_numbers<[1], [0], [0], [1], [0, 0, 1, 1], [], []>} : vector<16x128xbf16>, vector<128x128xbf16>, vector<16x128xf32> -> vector<16x128xf32>
    %c0_17 = arith.constant 0 : index
    %c0_18 = arith.constant 0 : index
    %25 = vector.load %arg7[%c0_17, %c0_18] : memref<1x128xf32, #tpu.memory_space<vmem>>, vector<1x128xf32>
    %26 = vector.broadcast %25 : vector<1x128xf32> to vector<16x128xf32>
    %27 = arith.addf %24, %26 : vector<16x128xf32>
    %c0_19 = arith.constant 0 : index
    %c0_20 = arith.constant 0 : index
    %28 = vector.load %arg8[%c0_19, %c0_20] : memref<16x128xf32, #tpu.memory_space<vmem>>, vector<16x128xf32>
    tpu.vector_store %arg8[%c0_19, %c0_20], %27 {strides = array<i32>} : memref<16x128xf32, #tpu.memory_space<vmem>>, vector<16x128xf32>,
    return
  }
  func.func @transform_0(%arg0: i32) -> (i32, i32) {
    %c0_i32 = arith.constant 0 : i32
    %c0_i32_0 = arith.constant 0 : i32
    return %arg0, %c0_i32 : i32, i32
  }
  func.func @transform_1(%arg0: i32) -> (i32, i32) {
    %c0_i32 = arith.constant 0 : i32
    %c0_i32_0 = arith.constant 0 : i32
    %c0_i32_1 = arith.constant 0 : i32
    return %c0_i32, %c0_i32_0 : i32, i32
  }
  func.func @transform_2(%arg0: i32) -> (i32, i32) {
    %c0_i32 = arith.constant 0 : i32
    %c0_i32_0 = arith.constant 0 : i32
    %c0_i32_1 = arith.constant 0 : i32
    return %c0_i32, %c0_i32_0 : i32, i32
  }
  func.func @transform_3(%arg0: i32) -> (i32, i32) {
    %c0_i32 = arith.constant 0 : i32
    %c0_i32_0 = arith.constant 0 : i32
    %c0_i32_1 = arith.constant 0 : i32
    return %c0_i32, %c0_i32_0 : i32, i32
  }
  func.func @transform_4(%arg0: i32) -> (i32, i32) {
    %c0_i32 = arith.constant 0 : i32
    %c0_i32_0 = arith.constant 0 : i32
    %c0_i32_1 = arith.constant 0 : i32
    return %c0_i32, %c0_i32_0 : i32, i32
  }
  func.func @transform_5(%arg0: i32) -> (i32, i32) {
    %c0_i32 = arith.constant 0 : i32
    %c0_i32_0 = arith.constant 0 : i32
    %c0_i32_1 = arith.constant 0 : i32
    return %c0_i32, %c0_i32_0 : i32, i32
  }
  func.func @transform_6(%arg0: i32) -> (i32, i32) {
    %c0_i32 = arith.constant 0 : i32
    %c0_i32_0 = arith.constant 0 : i32
    %c0_i32_1 = arith.constant 0 : i32
    return %c0_i32, %c0_i32_0 : i32, i32
  }
  func.func @transform_7(%arg0: i32) -> (i32, i32) {
    %c0_i32 = arith.constant 0 : i32
    %c0_i32_0 = arith.constant 0 : i32
    return %arg0, %c0_i32 : i32, i32
  }
}

</mosaic_0001>

<bundles_post_ra>
// kernel: base_network_forward.1
= control target key start
LH: loop header
LB: loop body
LE: loop exit
PB: predicated region body
PF: predicated region fallthrough
CT: control target
= control target key end

     0   :  { %v533_v0 = vmov 0.0   ;;  %vm534_vm0 = vmmov 0   ;;  %s695_s1 = inlined_call_operand.vmem [shape: bf16[128,128], index: 1, kind: input, shape index: {}]   ;;  %s696_s3 = inlined_call_operand.vmem [shape: bf16[128,128], index: 3, kind: input, shape index: {}]   ;;  %s697_s0 = inlined_call_operand.vmem [shape: bf16[16,128], index: 0, kind: input, shape index: {}]   ;;  %s698_s5 = inlined_call_operand.vmem [shape: bf16[128,128], index: 5, kind: input, shape index: {}]   ;;  %s699_s2 = inlined_call_operand.vmem [shape: f32[1,128], index: 2, kind: input, shape index: {}]   ;;  %s700_s4 = inlined_call_operand.vmem [shape: f32[1,128], index: 4, kind: input, shape index: {}]   ;;  %s701_s6 = inlined_call_operand.vmem [shape: f32[1,128], index: 6, kind: input, shape index: {}]   ;;  %s702_s7 = inlined_call_operand.vmem [shape: f32[16,128], index: 7, kind: output, shape index: {}]  }
   0x1   :  { %446 = vmatprep.subr.bf16.mxu0 %v533_v0  ;;  %v508_v1 = vld [vmem:[%s695_s1] sm:$0xff]   ;;  %462 = vmatprep.mubr.msk.bf16.mxu0 %vm534_vm0, %v533_v0  ;;  %v509_v2 = vld [vmem:[%s695_s1 + $0x8] sm:$0xff]   ;;  %v510_v3 = vld [vmem:[%s695_s1 + $0x10] sm:$0xff]  }
   0x2   :  { %466 = vmatprep.subr.bf16.mxu1 %v533_v0  ;;  %482 = vmatprep.mubr.msk.bf16.mxu1 %vm534_vm0, %v533_v0  ;;  %v517_v4 = vld [vmem:[%s696_s3] sm:$0xff]   ;;  %v511_v5 = vld [vmem:[%s695_s1 + $0x18] sm:$0xff]   ;;  %v518_v6 = vld [vmem:[%s696_s3 + $0x8] sm:$0xff]  }
   0x3   :  { %447 = vmatpush3.bf16.msra.mxu0 %v508_v1  ;;  %467 = vmatpush3.bf16.msra.mxu1 %v517_v4  ;;  %v512_v7 = vld [vmem:[%s695_s1 + $0x20] sm:$0xff]   ;;  %v519_v8 = vld [vmem:[%s696_s3 + $0x10] sm:$0xff]   ;;  %v513_v9 = vld [vmem:[%s695_s1 + $0x28] sm:$0xff]  }
   0x4   :  { %448 = vmatprep.subr.bf16.mxu0 %v533_v0  ;;  %468 = vmatprep.subr.bf16.mxu1 %v533_v0  ;;  %v520_v10 = vld [vmem:[%s696_s3 + $0x18] sm:$0xff]   ;;  %v514_v11 = vld [vmem:[%s695_s1 + $0x30] sm:$0xff]   ;;  %v521_v12 = vld [vmem:[%s696_s3 + $0x20] sm:$0xff]  }
   0x5   :  { %v515_v13 = vld [vmem:[%s695_s1 + $0x38] sm:$0xff]   ;;  %v522_v14 = vld [vmem:[%s696_s3 + $0x28] sm:$0xff]   ;;  %v516_v15 = vld [vmem:[%s697_s0] sm:$0xff]  }
   0x6   :  { %v523_v16 = vld [vmem:[%s696_s3 + $0x30] sm:$0xff]   ;;  %v524_v17 = vld [vmem:[%s696_s3 + $0x38] sm:$0xff]   ;;  %v525_v18 = vld [vmem:[%s698_s5] sm:$0xff]  }
   0x7   :  { %449 = vmatpush3.bf16.msra.mxu0 %v509_v2  ;;  %469 = vmatpush3.bf16.msra.mxu1 %v518_v6  ;;  %v526_v19 = vld [vmem:[%s698_s5 + $0x8] sm:$0xff]   ;;  %v527_v20 = vld [vmem:[%s698_s5 + $0x10] sm:$0xff]   ;;  %v528_v21 = vld [vmem:[%s698_s5 + $0x18] sm:$0xff]  }
   0x8   :  { %450 = vmatprep.subr.bf16.mxu0 %v533_v0  ;;  %470 = vmatprep.subr.bf16.mxu1 %v533_v0  ;;  %v529_v22 = vld [vmem:[%s698_s5 + $0x20] sm:$0xff]   ;;  %v530_v23 = vld [vmem:[%s698_s5 + $0x28] sm:$0xff]   ;;  %v531_v36 = vld [vmem:[%s698_s5 + $0x30] sm:$0xff]  }
   0x9   :  { %v391_v24 = vld [vmem:[%s699_s2] ss:$0 sm:$0xff]  ;;  %v532_v37 = vld [vmem:[%s698_s5 + $0x38] sm:$0xff]  }
   0xa   :  { %v401_v38 = vld [vmem:[%s700_s4] ss:$0 sm:$0xff] }
   0xb   :  { %451 = vmatpush3.bf16.msra.mxu0 %v510_v3  ;;  %471 = vmatpush3.bf16.msra.mxu1 %v519_v8  ;;  %v410_v50 = vld [vmem:[%s701_s6] ss:$0 sm:$0xff] }
   0xc   :  { %452 = vmatprep.subr.bf16.mxu0 %v533_v0  ;;  %472 = vmatprep.subr.bf16.mxu1 %v533_v0 }
   0xf   :  { %453 = vmatpush3.bf16.msra.mxu0 %v511_v5  ;;  %473 = vmatpush3.bf16.msra.mxu1 %v520_v10 }
  0x10   :  { %454 = vmatprep.subr.bf16.mxu0 %v533_v0  ;;  %474 = vmatprep.subr.bf16.mxu1 %v533_v0 }
  0x13   :  { %455 = vmatpush3.bf16.msra.mxu0 %v512_v7  ;;  %475 = vmatpush3.bf16.msra.mxu1 %v521_v12 }
  0x14   :  { %456 = vmatprep.subr.bf16.mxu0 %v533_v0  ;;  %476 = vmatprep.subr.bf16.mxu1 %v533_v0 }
  0x17   :  { %457 = vmatpush3.bf16.msra.mxu0 %v513_v9  ;;  %477 = vmatpush3.bf16.msra.mxu1 %v522_v14 }
  0x18   :  { %458 = vmatprep.subr.bf16.mxu0 %v533_v0  ;;  %478 = vmatprep.subr.bf16.mxu1 %v533_v0 }
  0x1b   :  { %459 = vmatpush3.bf16.msra.mxu0 %v514_v11  ;;  %479 = vmatpush3.bf16.msra.mxu1 %v523_v16 }
  0x1c   :  { %460 = vmatprep.subr.bf16.mxu0 %v533_v0  ;;  %480 = vmatprep.subr.bf16.mxu1 %v533_v0 }
  0x1f   :  { %461 = vmatpush3.bf16.msra.mxu0 %v515_v13  ;;  %481 = vmatpush3.bf16.msra.mxu1 %v524_v17 }
  0x20   :  { %486 = vmatprep.subr.bf16.mxu0 %v533_v0 }
  0x22   :  { %463 = vmatmul.mubr.bf16.vlgmr.msra.gmra.mrb[0].mxu0 %v516_v15 }
  0x23   :  { %502 = vmatprep.mubr.msk.bf16.mxu0 %vm534_vm0, %v533_v0  ;;  %487 = vmatpush3.bf16.msra.mxu0 %v525_v18 }
  0x24   :  { %488 = vmatprep.subr.bf16.mxu0 %v533_v0 }
  0x27   :  { %489 = vmatpush3.bf16.msra.mxu0 %v526_v19 }
  0x28   :  { %490 = vmatprep.subr.bf16.mxu0 %v533_v0 }
  0x2b   :  { %491 = vmatpush3.bf16.msra.mxu0 %v527_v20 }
  0x2c   :  { %492 = vmatprep.subr.bf16.mxu0 %v533_v0 }
  0x2f   :  { %493 = vmatpush3.bf16.msra.mxu0 %v528_v21 }
  0x30   :  { %494 = vmatprep.subr.bf16.mxu0 %v533_v0 }
  0x33   :  { %495 = vmatpush3.bf16.msra.mxu0 %v529_v22 }
  0x34   :  { %496 = vmatprep.subr.bf16.mxu0 %v533_v0 }
  0x37   :  { %497 = vmatpush3.bf16.msra.mxu0 %v530_v23 }
  0x38   :  { %498 = vmatprep.subr.bf16.mxu0 %v533_v0 }
  0x3b   :  { %499 = vmatpush3.bf16.msra.mxu0 %v531_v36 }
  0x3c   :  { %500 = vmatprep.subr.bf16.mxu0 %v533_v0 }
  0x3f   :  { %501 = vmatpush3.bf16.msra.mxu0 %v532_v37 }
  0xf5   :  { %v140_v25 = vpop.f32.mrb[0].mxu0 }
  0xf6   :  { %v141_v26 = vadd.f32 %v391_v24, %v140_v25  ;;  %v464_v27 = vpop.f32.mrb[1].mxu0 }
  0xf7   :  { %v143_v28 = vpop.f32.mrb[2].mxu0 }
  0xf8   :  { %v149_v29 = vmul.f32 0.01, %v141_v26  ;;  %v144_v30 = vadd.f32 %v391_v24, %v143_v28  ;;  %v465_v31 = vpop.f32.mrb[3].mxu0  ;;  %vm147_vm1 = vcmp.gt.f32.partialorder %v141_v26, 0.0 }
  0xfa   :  { %vm148_vm2 = vcmp.gt.f32.partialorder %v144_v30, 0.0  ;;  %v150_v32 = vmul.f32 0.01, %v144_v30  ;;  %v151_v33 = vsel %vm147_vm1, %v141_v26, %v149_v29 }
  0xfc   :  { %v152_v34 = vsel %vm148_vm2, %v144_v30, %v150_v32 }
  0xfd   :  { %v153_v35 = vpack.c.bf16 %v152_v34, %v151_v33 }
  0xff   :  { %483 = vmatmul.mubr.bf16.vlgmr.msra.gmra.mrb[0].mxu1 %v153_v35 }
 0x1d2   :  { %v259_v39 = vpop.f32.mrb[0].mxu1 }
 0x1d3   :  { %v260_v40 = vadd.f32 %v401_v38, %v259_v39  ;;  %v484_v41 = vpop.f32.mrb[1].mxu1 }
 0x1d4   :  { %v262_v42 = vpop.f32.mrb[2].mxu1 }
 0x1d5   :  { %v268_v43 = vmul.f32 0.01, %v260_v40  ;;  %v263_v44 = vadd.f32 %v401_v38, %v262_v42  ;;  %v485_v45 = vpop.f32.mrb[3].mxu1  ;;  %vm266_vm3 = vcmp.gt.f32.partialorder %v260_v40, 0.0 }
 0x1d7   :  { %vm267_vm4 = vcmp.gt.f32.partialorder %v263_v44, 0.0  ;;  %v269_v46 = vmul.f32 0.01, %v263_v44  ;;  %v270_v47 = vsel %vm266_vm3, %v260_v40, %v268_v43 }
 0x1d9   :  { %v271_v48 = vsel %vm267_vm4, %v263_v44, %v269_v46 }
 0x1da   :  { %v272_v49 = vpack.c.bf16 %v271_v48, %v270_v47 }
 0x1dc   :  { %503 = vmatmul.mubr.bf16.vlgmr.msra.gmra.mrb[4].mxu0 %v272_v49 }
 0x2af   :  { %v378_v51 = vpop.f32.mrb[4].mxu0 }
 0x2b0   :  { %v379_v52 = vadd.f32 %v410_v50, %v378_v51  ;;  %v504_v53 = vpop.f32.mrb[5].mxu0 }
 0x2b1   :  { %v381_v54 = vpop.f32.mrb[6].mxu0 }
 0x2b2   :  { %385 = vst [vmem:[%s702_s7] sm:$0xff] %v379_v52  ;;  %v382_v55 = vadd.f32 %v410_v50, %v381_v54  ;;  %v505_v56 = vpop.f32.mrb[7].mxu0 }
 0x2b4   :  { %386 = vst [vmem:[%s702_s7 + $0x8] sm:$0xff] %v382_v55 }

</bundles_post_ra>
